<compile_context>
chip_gen: v6e
topology: v6e:2x2x1
jax: 0.10.0
libtpu: 0.0.40
codegen_flags: <defaults>
</compile_context>

<pallas_src>
import functools

import numpy as np

import jax
import jax.numpy as jnp
from jax.experimental import pallas as pl
from jax.experimental.pallas import tpu as pltpu

CHANNELS = 4
RADIUS = 2
BETA = 1.0


def _batches_per_block(N, C):
    """Smallest divisor nb of N such that nb*C rows fill whole 8-sublane tiles."""
    for nb in range(1, N + 1):
        if N % nb == 0 and (nb * C) % 8 == 0:
            return nb
    return N  # fall back to a single full-size block (always spec-legal)


def _plus_stencil_matrix(H, W, radius):
    """(L, L) circulant 0/1 matrix: K[l, m] = 1 iff m is a plus-neighbour of l."""
    L = H * W
    idx = np.arange(L)
    h, w = idx // W, idx % W
    K = np.zeros((L, L), np.float32)
    for d in range(1, radius + 1):
        for dh, dw in ((d, 0), (-d, 0), (0, d), (0, -d)):
            nh = (h + dh) % H
            nw = (w + dw) % W
            K[idx, nh * W + nw] += 1.0
    return jnp.asarray(K)


def _group_matrix(rows, C, beta):
    """(rows, rows) channel-group sum+broadcast matrix, pre-scaled by -2*beta."""
    g = np.arange(rows) // C
    m = (g[:, None] == g[None, :]).astype(np.float32) * np.float32(-2.0 * beta)
    return jnp.asarray(m)


def _ising_kernel(g_ref, k_ref, rand_ref, drop_ref, s_ref, out_ref, *, num_steps):
    """num_steps fused Metropolis sweeps on a (BR, L) lane/sublane-dense block."""
    # State lives in the output block; each sweep updates it in place.
    out_ref[...] = s_ref[...]
    gmat = g_ref[...]   # (BR, BR) channel-group sum + broadcast, scaled by -2*beta
    kmat = k_ref[...]   # (L, L)  circulant plus-stencil (MXU replaces 12 rolls/sweep)

    def sweep(t, carry):
        s = out_ref[...]                                                   # (BR, L)
        # Per-row circular plus-neighbour sum, then channel-sum + broadcast,
        # with the -2*beta Metropolis scale folded into gmat: arg = -beta*delta_e.
        nbr = jnp.dot(s, kmat, preferred_element_type=jnp.float32)         # MXU
        arg = s * jnp.dot(gmat, nbr, preferred_element_type=jnp.float32)   # MXU + 1 VPU mul
        # p >= 1 exactly where delta_e <= 0, and rand in [0,1), so the reference's
        # explicit definite-flip clamp (p := 1) is redundant and omitted.
        p = jnp.exp(arg)
        flip = jnp.logical_and(rand_ref[t] < p, drop_ref[t] > 0.5)         # dropout shared
        out_ref[...] = jnp.where(flip, -s, s)
        return carry

    jax.lax.fori_loop(0, num_steps, sweep, 0)


@functools.partial(jax.jit, static_argnames=("channels", "radius", "beta"))
def ising_sweeps(x, rand, drop, *, channels=CHANNELS, radius=RADIUS, beta=BETA):
    """Run rand.shape[0] fused Metropolis sweeps with explicit random fields.

    rand: (T, N, channels, H, W) uniforms (torch.rand_like(s) per sweep)
    drop: (T, H, W) uniforms; drop > 0.5 is the mask shared over batch & channels.
    """
    s = x[:, :channels].astype(jnp.float32)
    N, C, H, W = s.shape
    L, R = H * W, N * C
    T = rand.shape[0]

    nb = _batches_per_block(N, C)
    BR = nb * C
    grid = (N // nb,)

    kmat = _plus_stencil_matrix(H, W, radius)
    gmat = _group_matrix(BR, C, beta)

    s_flat = s.reshape(R, L)
    rand_f = rand.astype(jnp.float32).reshape(T, R, L)
    drop_f = drop.astype(jnp.float32).reshape(T, 1, L)

    # Explicit VMEM budget (v7x has 64 MiB physical / 32 MiB default scoped limit).
    est = 4 * (BR * BR + L * L + T * BR * L + T * L + 3 * BR * L)
    vmem_bytes = int(min(64 * 1024 * 1024, max(32 * 1024 * 1024, 2 * est)))

    out = pl.pallas_call(
        functools.partial(_ising_kernel, num_steps=T),
        out_shape=jax.ShapeDtypeStruct((R, L), jnp.float32),
        grid=grid,
        in_specs=[
            pl.BlockSpec((BR, BR), lambda i: (0, 0)),       # group matrix (shared)
            pl.BlockSpec((L, L), lambda i: (0, 0)),         # plus-stencil (shared)
            pl.BlockSpec((T, BR, L), lambda i: (0, i, 0)),  # per-site uniforms
            pl.BlockSpec((T, 1, L), lambda i: (0, 0, 0)),   # dropout uniforms (shared)
            pl.BlockSpec((BR, L), lambda i: (i, 0)),        # spins
        ],
        out_specs=pl.BlockSpec((BR, L), lambda i: (i, 0)),
        compiler_params=pltpu.CompilerParams(
            dimension_semantics=("parallel",),              # batch-group axis (v7x 2 TCs)
            vmem_limit_bytes=vmem_bytes,
        ),
    )(gmat, kmat, rand_f, drop_f, s_flat)
    return out.reshape(N, C, H, W)


def ising_forward(x, key, *, channels=CHANNELS, radius=RADIUS, beta=BETA, num_steps=1):
    """num_steps fused Metropolis sweeps; num_steps=1 matches Rule.forward
    (up to the PRNG stream: jax.random instead of torch.rand)."""
    N, H, W = x.shape[0], x.shape[2], x.shape[3]
    kr, kd = jax.random.split(key)
    rand = jax.random.uniform(kr, (num_steps, N, channels, H, W), jnp.float32)
    drop = jax.random.uniform(kd, (num_steps, H, W), jnp.float32)
    return ising_sweeps(x, rand, drop, channels=channels, radius=radius, beta=beta)


def _reference_sweeps(x, rand, drop, *, channels, radius, beta):
    """Pure-JAX transcription of Rule.forward (circular conv via jnp.roll)."""
    s = x[:, :channels].astype(jnp.float32)
    N, C, H, W = s.shape
    for t in range(rand.shape[0]):
        ssum = jnp.sum(s, axis=1, keepdims=True)
        Js = jnp.zeros_like(ssum)
        for d in range(1, radius + 1):
            for ax in (2, 3):
                Js = Js + jnp.roll(ssum, d, axis=ax) + jnp.roll(ssum, -d, axis=ax)
        delta_e = 2.0 * s * Js
        p = jnp.where(delta_e <= 0.0, 1.0, jnp.exp(-beta * delta_e))
        flip = jnp.logical_and(rand[t].reshape(N, C, H, W) < p,
                               drop[t].reshape(1, 1, H, W) > 0.5)
        s = jnp.where(flip, -s, s)
    return s


if __name__ == "__main__":
    key = jax.random.PRNGKey(0)
    k_init, k_run1, k_run2, k_r, k_d = jax.random.split(key, 5)

    N, H, W = 2, 16, 16
    # Deterministic +/-1 spin grid (mimics isingCA.initGrid) plus the beta plane.
    spins = (jax.random.uniform(k_init, (N, CHANNELS, H, W)) > 0.5).astype(jnp.float32) * 2.0 - 1.0
    beta_plane = jnp.full((N, 1, H, W), float(BETA), jnp.float32)
    x = jnp.concatenate([spins, beta_plane], axis=1)            # (2, 5, 16, 16)

    # 1) Single sweep == the PyTorch module forward.
    out = ising_forward(x, k_run1)
    jax.block_until_ready(out)
    assert out.shape == (N, CHANNELS, H, W)
    assert bool(jnp.all(jnp.abs(out) == jnp.abs(spins)))        # output is input with sign flips

    # 2) Fused multi-sweep call (step fusion: one launch, 8 Metropolis sweeps).
    out8 = ising_forward(x, k_run2, num_steps=8)
    jax.block_until_ready(out8)
    assert out8.shape == (N, CHANNELS, H, W)
    assert bool(jnp.all(jnp.abs(out8) == jnp.abs(spins)))

    # 3) Cross-check the kernel against a pure-JAX reference using shared randoms.
    T = 3
    rand = jax.random.uniform(k_r, (T, N, CHANNELS, H, W), jnp.float32)
    drop = jax.random.uniform(k_d, (T, H, W), jnp.float32)
    got = ising_sweeps(x, rand, drop)
    want = _reference_sweeps(x, rand, drop, channels=CHANNELS, radius=RADIUS, beta=BETA)
    jax.block_until_ready((got, want))
    mismatch = float(jnp.mean((got != want).astype(jnp.float32)))
    assert mismatch <= 1e-3, f"kernel vs reference mismatch fraction = {mismatch}"

    print("KERNEL_OK")
</pallas_src>

<mosaic_0001>
module attributes {stable_mosaic.version = 11 : i64} {
  func.func @_ising_kernel(%arg0: i32, %arg1: memref<8x8xf32, #tpu.memory_space<vmem>>, %arg2: memref<256x256xf32, #tpu.memory_space<vmem>>, %arg3: memref<1x8x256xf32, #tpu.memory_space<vmem>>, %arg4: memref<1x1x256xf32, #tpu.memory_space<vmem>>, %arg5: memref<8x256xf32, #tpu.memory_space<vmem>>, %arg6: memref<8x256xf32, #tpu.memory_space<vmem>>) attributes {dimension_semantics = [#tpu.dimension_semantics<parallel>], iteration_bounds = array<i64: 1>, scalar_prefetch = 0 : i64, scratch_operands = 0 : i64, tpu.core_type = #tpu.core_type<tc>, window_params = [{pipeline_mode = #tpu.pipeline_mode<synchronous>, transform_indices = @transform_0, window_bounds = array<i64: 8, 8>}, {pipeline_mode = #tpu.pipeline_mode<synchronous>, transform_indices = @transform_1, window_bounds = array<i64: 256, 256>}, {transform_indices = @transform_2, window_bounds = array<i64: 1, 8, 256>}, {pipeline_mode = #tpu.pipeline_mode<synchronous>, transform_indices = @transform_3, window_bounds = array<i64: 1, 1, 256>}, {transform_indices = @transform_4, window_bounds = array<i64: 8, 256>}, {transform_indices = @transform_5, window_bounds = array<i64: 8, 256>}]} {
    %c0 = arith.constant 0 : index
    %c0_0 = arith.constant 0 : index
    %0 = vector.load %arg5[%c0, %c0_0] : memref<8x256xf32, #tpu.memory_space<vmem>>, vector<8x256xf32>
    %c0_1 = arith.constant 0 : index
    %c0_2 = arith.constant 0 : index
    %1 = vector.load %arg6[%c0_1, %c0_2] : memref<8x256xf32, #tpu.memory_space<vmem>>, vector<8x256xf32>
    tpu.vector_store %arg6[%c0_1, %c0_2], %0 {strides = array<i32>} : memref<8x256xf32, #tpu.memory_space<vmem>>, vector<8x256xf32>,
    %c0_3 = arith.constant 0 : index
    %c0_4 = arith.constant 0 : index
    %2 = vector.load %arg1[%c0_3, %c0_4] : memref<8x8xf32, #tpu.memory_space<vmem>>, vector<8x8xf32>
    %c0_5 = arith.constant 0 : index
    %c0_6 = arith.constant 0 : index
    %3 = vector.load %arg2[%c0_5, %c0_6] : memref<256x256xf32, #tpu.memory_space<vmem>>, vector<256x256xf32>
    %c0_i32 = arith.constant 0 : i32
    %c0_7 = arith.constant 0 : index
    %c0_8 = arith.constant 0 : index
    %4 = vector.load %arg6[%c0_7, %c0_8] : memref<8x256xf32, #tpu.memory_space<vmem>>, vector<8x256xf32>
    %cst = arith.constant dense<0.000000e+00> : vector<8x256xf32>
    %5 = tpu.matmul %4, %3, %cst {dimension_numbers = #tpu.dot_dimension_numbers<[1], [0], [0], [1], [0, 0, 1, 1], [], []>} : vector<8x256xf32>, vector<256x256xf32>, vector<8x256xf32> -> vector<8x256xf32>
    %cst_9 = arith.constant dense<0.000000e+00> : vector<8x256xf32>
    %6 = tpu.matmul %2, %5, %cst_9 {dimension_numbers = #tpu.dot_dimension_numbers<[1], [0], [0], [1], [0, 0, 1, 1], [], []>} : vector<8x8xf32>, vector<8x256xf32>, vector<8x256xf32> -> vector<8x256xf32>
    %7 = arith.mulf %4, %6 : vector<8x256xf32>
    %8 = math.exp %7 : vector<8x256xf32>
    %9 = arith.index_cast %c0_i32 : i32 to index
    %c0_10 = arith.constant 0 : index
    %c0_11 = arith.constant 0 : index
    %10 = vector.load %arg3[%9, %c0_10, %c0_11] : memref<1x8x256xf32, #tpu.memory_space<vmem>>, vector<1x8x256xf32>
    %11 = vector.shape_cast %10 : vector<1x8x256xf32> to vector<8x256xf32>
    %12 = arith.cmpf olt, %11, %8 : vector<8x256xf32>
    %13 = arith.index_cast %c0_i32 : i32 to index
    %c0_12 = arith.constant 0 : index
    %c0_13 = arith.constant 0 : index
    %14 = vector.load %arg4[%13, %c0_12, %c0_13] : memref<1x1x256xf32, #tpu.memory_space<vmem>>, vector<1x1x256xf32>
    %15 = vector.shape_cast %14 : vector<1x1x256xf32> to vector<1x256xf32>
    %cst_14 = arith.constant 5.000000e-01 : f32
    %16 = vector.broadcast %cst_14 : f32 to vector<1x256xf32>
    %17 = arith.cmpf ogt, %15, %16 : vector<1x256xf32>
    %18 = vector.broadcast %17 : vector<1x256xi1> to vector<8x256xi1>
    %19 = arith.andi %12, %18 : vector<8x256xi1>
    %cst_15 = arith.constant 0.000000e+00 : f32
    %20 = vector.broadcast %cst_15 : f32 to vector<8x256xf32>
    %21 = arith.subf %20, %4 : vector<8x256xf32>
    %22 = arith.select %19, %21, %4 : vector<8x256xi1>, vector<8x256xf32>
    %c0_16 = arith.constant 0 : index
    %c0_17 = arith.constant 0 : index
    %23 = vector.load %arg6[%c0_16, %c0_17] : memref<8x256xf32, #tpu.memory_space<vmem>>, vector<8x256xf32>
    tpu.vector_store %arg6[%c0_16, %c0_17], %22 {strides = array<i32>} : memref<8x256xf32, #tpu.memory_space<vmem>>, vector<8x256xf32>,
    %c1_i32 = arith.constant 1 : i32
    return
  }
  func.func @transform_0(%arg0: i32) -> (i32, i32) {
    %c0_i32 = arith.constant 0 : i32
    %c0_i32_0 = arith.constant 0 : i32
    %c0_i32_1 = arith.constant 0 : i32
    return %c0_i32, %c0_i32_0 : i32, i32
  }
  func.func @transform_1(%arg0: i32) -> (i32, i32) {
    %c0_i32 = arith.constant 0 : i32
    %c0_i32_0 = arith.constant 0 : i32
    %c0_i32_1 = arith.constant 0 : i32
    return %c0_i32, %c0_i32_0 : i32, i32
  }
  func.func @transform_2(%arg0: i32) -> (i32, i32, i32) {
    %c0_i32 = arith.constant 0 : i32
    %c0_i32_0 = arith.constant 0 : i32
    %c0_i32_1 = arith.constant 0 : i32
    return %c0_i32, %arg0, %c0_i32_0 : i32, i32, i32
  }
  func.func @transform_3(%arg0: i32) -> (i32, i32, i32) {
    %c0_i32 = arith.constant 0 : i32
    %c0_i32_0 = arith.constant 0 : i32
    %c0_i32_1 = arith.constant 0 : i32
    %c0_i32_2 = arith.constant 0 : i32
    return %c0_i32, %c0_i32_0, %c0_i32_1 : i32, i32, i32
  }
  func.func @transform_4(%arg0: i32) -> (i32, i32) {
    %c0_i32 = arith.constant 0 : i32
    %c0_i32_0 = arith.constant 0 : i32
    return %arg0, %c0_i32 : i32, i32
  }
  func.func @transform_5(%arg0: i32) -> (i32, i32) {
    %c0_i32 = arith.constant 0 : i32
    %c0_i32_0 = arith.constant 0 : i32
    return %arg0, %c0_i32 : i32, i32
  }
}

</mosaic_0001>

<bundles_post_ra>
// kernel: ising_sweeps.1
= control target key start
LH: loop header
LB: loop body
LE: loop exit
PB: predicated region body
PF: predicated region fallthrough
CT: control target
= control target key end

     0   :  { %vm162_vm0 = vcmask 64512   ;;  %s533_s1 = inlined_call_operand.vmem [shape: f32[256,256], index: 1, kind: input, shape index: {}]   ;;  %s534_s4 = inlined_call_operand.vmem [shape: f32[8,256], index: 4, kind: input, shape index: {}]   ;;  %s535_s0 = inlined_call_operand.vmem [shape: f32[8,8], index: 0, kind: input, shape index: {}]   ;;  %s536_s3 = inlined_call_operand.vmem [shape: f32[1,1,256], index: 3, kind: input, shape index: {}]   ;;  %s537_s2 = inlined_call_operand.vmem [shape: f32[1,8,256], index: 2, kind: input, shape index: {}]   ;;  %s538_s5 = inlined_call_operand.vmem [shape: f32[8,256], index: 5, kind: output, shape index: {}]  }
   0x1   :  { %v56_v0 = vld [vmem:[%s533_s1 + $0xf8] sm:$0xff]  ;;  %v55_v1 = vld [vmem:[%s533_s1 + $0xf0] sm:$0xff]  ;;  %v54_v2 = vld [vmem:[%s533_s1 + $0xe8] sm:$0xff] }
   0x2   :  { %91 = vmatprep.subr.mxu0 %v56_v0  ;;  %v53_v3 = vld [vmem:[%s533_s1 + $0xe0] sm:$0xff]  ;;  %v52_v4 = vld [vmem:[%s533_s1 + $0xd8] sm:$0xff]  ;;  %v51_v5 = vld [vmem:[%s533_s1 + $0xd0] sm:$0xff] }
   0x3   :  { %92 = vmatpush1.msra.mxu0 %v55_v1  ;;  %v50_v6 = vld [vmem:[%s533_s1 + $0xc8] sm:$0xff]  ;;  %v49_v7 = vld [vmem:[%s533_s1 + $0xc0] sm:$0xff]  ;;  %v48_v8 = vld [vmem:[%s533_s1 + $0xb8] sm:$0xff] }
   0x4   :  { %93 = vmatprep.subr.mxu0 %v54_v2  ;;  %v47_v9 = vld [vmem:[%s533_s1 + $0xb0] sm:$0xff]  ;;  %v46_v10 = vld [vmem:[%s533_s1 + $0xa8] sm:$0xff]  ;;  %v45_v11 = vld [vmem:[%s533_s1 + $0xa0] sm:$0xff]  ;;  %v279_v2 = vmov 0.0  }
   0x5   :  { %94 = vmatpush1.msra.mxu0 %v53_v3  ;;  %v44_v12 = vld [vmem:[%s533_s1 + $0x98] sm:$0xff]  ;;  %v43_v13 = vld [vmem:[%s533_s1 + $0x90] sm:$0xff]  ;;  %v42_v14 = vld [vmem:[%s533_s1 + $0x88] sm:$0xff]  ;;  %230 = vmatprep.mubr.f32.mxu1 %v279_v2 }
   0x6   :  { %95 = vmatprep.subr.mxu0 %v52_v4  ;;  %v41_v15 = vld [vmem:[%s533_s1 + $0x80] sm:$0xff]  ;;  %v40_v16 = vld [vmem:[%s533_s1 + $0x78] sm:$0xff]  ;;  %v39_v17 = vld [vmem:[%s533_s1 + $0x70] sm:$0xff] }
   0x7   :  { %96 = vmatpush1.msra.mxu0 %v51_v5  ;;  %v38_v18 = vld [vmem:[%s533_s1 + $0x68] sm:$0xff]  ;;  %v37_v19 = vld [vmem:[%s533_s1 + $0x60] sm:$0xff]  ;;  %v36_v20 = vld [vmem:[%s533_s1 + $0x58] sm:$0xff] }
   0x8   :  { %97 = vmatprep.subr.mxu0 %v50_v6  ;;  %v35_v21 = vld [vmem:[%s533_s1 + $0x50] sm:$0xff]  ;;  %v34_v22 = vld [vmem:[%s533_s1 + $0x48] sm:$0xff]  ;;  %v33_v23 = vld [vmem:[%s533_s1 + $0x40] sm:$0xff] }
   0x9   :  { %98 = vmatpush1.msra.mxu0 %v49_v7  ;;  %v386_v24 = vld [vmem:[%s534_s4 + $0x8] sm:$0xff]  ;;  %v32_v25 = vld [vmem:[%s533_s1 + $0x38] sm:$0xff]  ;;  %v31_v26 = vld [vmem:[%s533_s1 + $0x30] sm:$0xff] }
   0xa   :  { %99 = vmatprep.subr.mxu0 %v48_v8  ;;  %155 = vmatprep.mubr.f32.mxu0 %v386_v24  ;;  %v30_v27 = vld [vmem:[%s533_s1 + $0x28] sm:$0xff]  ;;  %v29_v28 = vld [vmem:[%s533_s1 + $0x20] sm:$0xff]  ;;  %v28_v29 = vld [vmem:[%s533_s1 + $0x18] sm:$0xff]  ;;  %v250_v8 = vlaneseq }
   0xb   :  { %100 = vmatpush1.msra.mxu0 %v47_v9  ;;  %v27_v30 = vld [vmem:[%s533_s1 + $0x10] sm:$0xff]  ;;  %v26_v31 = vld [vmem:[%s533_s1 + $0x8] sm:$0xff]  ;;  %v25_v32 = vld [vmem:[%s533_s1] sm:$0xff] }
   0xc   :  { %101 = vmatprep.subr.mxu0 %v46_v10  ;;  %v88_v33 = vld [vmem:[%s533_s1 + $0x1f8] sm:$0xff]  ;;  %v87_v34 = vld [vmem:[%s533_s1 + $0x1f0] sm:$0xff]  ;;  %v86_v35 = vld [vmem:[%s533_s1 + $0x1e8] sm:$0xff] }
   0xd   :  { %102 = vmatpush1.msra.mxu0 %v45_v11  ;;  %v85_v36 = vld [vmem:[%s533_s1 + $0x1e0] sm:$0xff]  ;;  %v84_v37 = vld [vmem:[%s533_s1 + $0x1d8] sm:$0xff]  ;;  %v83_v38 = vld [vmem:[%s533_s1 + $0x1d0] sm:$0xff] }
   0xe   :  { %103 = vmatprep.subr.mxu0 %v44_v12  ;;  %v82_v39 = vld [vmem:[%s533_s1 + $0x1c8] sm:$0xff]  ;;  %v81_v40 = vld [vmem:[%s533_s1 + $0x1c0] sm:$0xff]  ;;  %v80_v41 = vld [vmem:[%s533_s1 + $0x1b8] sm:$0xff] }
   0xf   :  { %104 = vmatpush1.msra.mxu0 %v43_v13  ;;  %v79_v42 = vld [vmem:[%s533_s1 + $0x1b0] sm:$0xff]  ;;  %v78_v43 = vld [vmem:[%s533_s1 + $0x1a8] sm:$0xff]  ;;  %v77_v44 = vld [vmem:[%s533_s1 + $0x1a0] sm:$0xff]  ;;  %v251_v13 = vshrl.u32 %v250_v8, 7 }
  0x10   :  { %105 = vmatprep.subr.mxu0 %v42_v14  ;;  %v76_v45 = vld [vmem:[%s533_s1 + $0x198] sm:$0xff]  ;;  %v75_v46 = vld [vmem:[%s533_s1 + $0x190] sm:$0xff]  ;;  %v74_v47 = vld [vmem:[%s533_s1 + $0x188] sm:$0xff] }
  0x11   :  { %106 = vmatpush1.msra.mxu0 %v41_v15  ;;  %v73_v48 = vld [vmem:[%s533_s1 + $0x180] sm:$0xff]  ;;  %v72_v49 = vld [vmem:[%s533_s1 + $0x178] sm:$0xff]  ;;  %v71_v50 = vld [vmem:[%s533_s1 + $0x170] sm:$0xff]  ;;  %v252_v15 = vsub.s32 0, %v251_v13 }
  0x12   :  { %107 = vmatprep.subr.mxu0 %v40_v16  ;;  %v70_v51 = vld [vmem:[%s533_s1 + $0x168] sm:$0xff]  ;;  %v69_v52 = vld [vmem:[%s533_s1 + $0x160] sm:$0xff]  ;;  %v68_v53 = vld [vmem:[%s533_s1 + $0x158] sm:$0xff]  ;;  %v280_v16 = vmov 0  }
  0x13   :  { %108 = vmatpush1.msra.mxu0 %v39_v17  ;;  %v67_v54 = vld [vmem:[%s533_s1 + $0x150] sm:$0xff]  ;;  %v66_v55 = vld [vmem:[%s533_s1 + $0x148] sm:$0xff]  ;;  %v65_v56 = vld [vmem:[%s533_s1 + $0x140] sm:$0xff] }
  0x14   :  { %109 = vmatprep.subr.mxu0 %v38_v18  ;;  %v64_v57 = vld [vmem:[%s533_s1 + $0x138] sm:$0xff]  ;;  %v63_v58 = vld [vmem:[%s533_s1 + $0x130] sm:$0xff]  ;;  %v62_v59 = vld [vmem:[%s533_s1 + $0x128] sm:$0xff]  ;;  %v256_v18 = vsub.s32 1, %v251_v13 }
  0x15   :  { %110 = vmatpush1.msra.mxu0 %v37_v19  ;;  %v61_v60 = vld [vmem:[%s533_s1 + $0x120] sm:$0xff]  ;;  %v60_v61 = vld [vmem:[%s533_s1 + $0x118] sm:$0xff]  ;;  %v59_v62 = vld [vmem:[%s533_s1 + $0x110] sm:$0xff] }
  0x16   :  { %111 = vmatprep.subr.mxu0 %v36_v20  ;;  %v58_v63 = vld [vmem:[%s533_s1 + $0x108] sm:$0xff]  ;;  %v57_v0 = vld [vmem:[%s533_s1 + $0x100] sm:$0xff] }
  0x17   :  { %112 = vmatpush1.msra.mxu0 %v35_v21  ;;  %v20_v1 = vld [vmem:[%s534_s4] sm:$0xff] }
  0x18   :  { %113 = vmatprep.subr.mxu0 %v34_v22  ;;  %v24_v5 = vld [vmem:[%s535_s0] sm:$0xff]  ;;  %v262_v22 = vsub.f32 0.0, %v20_v1 }
  0x19   :  { %114 = vmatpush1.msra.mxu0 %v33_v23  ;;  %v247_v12 = vld [vmem:[%s536_s3] sm:$0x3] }
  0x1a   :  { %115 = vmatprep.subr.mxu0 %v32_v25  ;;  %vm248_vm1 = vcmp.gt.f32.partialorder %v247_v12, 0.5  ;;  %v243_v21 = vld [vmem:[%s537_s2] sm:$0xff]  ;;  %v244_v25 = vld [vmem:[%s537_s2 + $0x8] sm:$0xff] }
  0x1b   :  { %116 = vmatpush1.msra.mxu0 %v31_v26  ;;  %v249_v17 = vsel %vm248_vm1, 1, %v280_v16  ;;  %v263_v26 = vsub.f32 0.0, %v386_v24 }
  0x1c   :  { %117 = vmatprep.subr.mxu0 %v30_v27  ;;  %v253_v19 = vrot.slane %v249_v17, %v252_v15  ;;  %v257_v20 = vrot.slane %v249_v17, %v256_v18 }
  0x1d   :  { %118 = vmatpush1.msra.mxu0 %v29_v28 }
  0x1e   :  { %119 = vmatprep.subr.mxu0 %v28_v29  ;;  %vm258_vm2 = vcmp.eq.s32.totalorder %v253_v19, 1  ;;  %vm259_vm4 = vcmp.eq.s32.totalorder %v257_v20, 1 }
  0x1f   :  { %120 = vmatpush1.msra.mxu0 %v27_v30 }
  0x20   :  { %121 = vmatprep.subr.mxu0 %v26_v31 }
  0x21   :  { %122 = vmatpush1.msra.mxu0 %v25_v32 }
  0x22   :  { %123 = vmatprep.subr.mxu0 %v88_v33 }
  0x23   :  { %124 = vmatpush2.msra.mxu0 %v87_v34 }
  0x24   :  { %125 = vmatprep.subr.mxu0 %v86_v35 }
  0x25   :  { %126 = vmatpush2.msra.mxu0 %v85_v36 }
  0x26   :  { %127 = vmatprep.subr.mxu0 %v84_v37 }
  0x27   :  { %128 = vmatpush2.msra.mxu0 %v83_v38 }
  0x28   :  { %129 = vmatprep.subr.mxu0 %v82_v39 }
  0x29   :  { %130 = vmatpush2.msra.mxu0 %v81_v40 }
  0x2a   :  { %131 = vmatprep.subr.mxu0 %v80_v41 }
  0x2b   :  { %132 = vmatpush2.msra.mxu0 %v79_v42 }
  0x2c   :  { %133 = vmatprep.subr.mxu0 %v78_v43 }
  0x2d   :  { %134 = vmatpush2.msra.mxu0 %v77_v44 }
  0x2e   :  { %135 = vmatprep.subr.mxu0 %v76_v45 }
  0x2f   :  { %136 = vmatpush2.msra.mxu0 %v75_v46 }
  0x30   :  { %137 = vmatprep.subr.mxu0 %v74_v47 }
  0x31   :  { %138 = vmatpush2.msra.mxu0 %v73_v48 }
  0x32   :  { %139 = vmatprep.subr.mxu0 %v72_v49 }
  0x33   :  { %140 = vmatpush2.msra.mxu0 %v71_v50 }
  0x34   :  { %141 = vmatprep.subr.mxu0 %v70_v51 }
  0x35   :  { %142 = vmatpush2.msra.mxu0 %v69_v52 }
  0x36   :  { %143 = vmatprep.subr.mxu0 %v68_v53 }
  0x37   :  { %144 = vmatpush2.msra.mxu0 %v67_v54 }
  0x38   :  { %145 = vmatprep.subr.mxu0 %v66_v55 }
  0x39   :  { %146 = vmatpush2.msra.mxu0 %v65_v56 }
  0x3a   :  { %147 = vmatprep.subr.mxu0 %v64_v57 }
  0x3b   :  { %148 = vmatpush2.msra.mxu0 %v63_v58 }
  0x3c   :  { %149 = vmatprep.subr.mxu0 %v62_v59 }
  0x3d   :  { %150 = vmatpush2.msra.mxu0 %v61_v60 }
  0x3e   :  { %151 = vmatprep.subr.mxu0 %v60_v61 }
  0x3f   :  { %152 = vmatpush2.msra.mxu0 %v59_v62 }
  0x40   :  { %153 = vmatprep.subr.mxu0 %v58_v63 }
  0x41   :  { %154 = vmatpush2.msra.mxu0 %v57_v0 }
  0x42   :  { %156 = vmatmul.mubr.f32.vlgmr.msra.gmra.mxu0 %v20_v1 }
 0x102   :  { %v157_v3 = vpop.f32.mrf.mxu0 }
 0x104   :  { %v159_v4 = vpop.f32.mrf.mxu0 }
 0x105   :  { %196 = vmatprep.subr.mxu1 %v159_v4 }
 0x106   :  { %197 = vmatpush1.msra.mxu1 %v157_v3 }
 0x107   :  { %272 = vmatmul.mubr.msk.f32.vlgmr.msra.gmra.mxu1 %vm162_vm0, %v24_v5 }
 0x1c7   :  { %v232_v6 = vpop.f32.mrf.mxu1 }
 0x1c8   :  { %v237_v7 = vmul.f32 %v232_v6, %v20_v1 }
 0x1c9   :  { %v234_v9 = vpop.f32.mrf.mxu1 }
 0x1ca   :  { %v239_v10 = vmul.f32 1.442695, %v237_v7  ;;  %v238_v11 = vmul.f32 %v234_v9, %v386_v24 }
 0x1cc   :  { %275 = vpow2.f32 %v239_v10  ;;  %v241_v14 = vmul.f32 1.442695, %v238_v11 }
 0x1ce   :  { %277 = vpow2.f32 %v241_v14 }
 0x1d9   :  { %v276_v23 = vpop.eup %275 }
 0x1da   :  { %vm245_vm3 = vcmp.lt.f32.partialorder %v243_v21, %v276_v23 }
 0x1db   :  { %v278_v27 = vpop.eup %277  ;;  %vm260_vm5 = vmand %vm245_vm3, %vm258_vm2 }
 0x1dc   :  { %v264_v28 = vsel %vm260_vm5, %v262_v22, %v20_v1  ;;  %vm246_vm6 = vcmp.lt.f32.partialorder %v244_v25, %v278_v27 }
 0x1dd   :  { %266 = vst [vmem:[%s538_s5] sm:$0xff] %v264_v28  ;;  %vm261_vm7 = vmand %vm246_vm6, %vm259_vm4 }
 0x1de   :  { %v265_v29 = vsel %vm261_vm7, %v263_v26, %v386_v24 }
 0x1df   :  { %267 = vst [vmem:[%s538_s5 + $0x8] sm:$0xff] %v265_v29 }

</bundles_post_ra>
